<compile_context>
chip_gen: v7x
topology: tpu7x:2x2x1
jax: 0.10.0
libtpu: 0.0.40
codegen_flags: <defaults>
</compile_context>

<pallas_src>
import math

import jax
import jax.numpy as jnp
from jax import lax
from jax.experimental import pallas as pl
from jax.experimental.pallas import tpu as pltpu


# ---------------------------------------------------------------------------
# Pallas kernel: fused 4-layer MLP (3x ReLU + linear head, lane-dense output)
# ---------------------------------------------------------------------------
def _critic_kernel(x_ref,
                   w1_ref, b1_ref,
                   w2_ref, b2_ref,
                   w3_ref, b3_ref,
                   w4_ref, b4_ref,
                   out_ref):
    # In-kernel bf16 cast (state arrives f32): removes a separate XLA cast
    # pass over HBM; the VALU has plenty of slack next to the MXU pushes.
    x = x_ref[...].astype(jnp.bfloat16)                                  # (TB, S)

    # fc1 + ReLU : MXU bf16 -> f32 accumulator
    h = jnp.dot(x, w1_ref[...], preferred_element_type=jnp.float32)     # (TB, 512)
    h = jnp.maximum(h + b1_ref[...], 0.0)

    # fc2 + ReLU
    h = jnp.dot(h.astype(jnp.bfloat16), w2_ref[...],
                preferred_element_type=jnp.float32)                     # (TB, 256)
    h = jnp.maximum(h + b2_ref[...], 0.0)

    # fc3 + ReLU
    h = jnp.dot(h.astype(jnp.bfloat16), w3_ref[...],
                preferred_element_type=jnp.float32)                     # (TB, 64)
    h = jnp.maximum(h + b3_ref[...], 0.0)

    # fc_out (64 -> 1), emitted lane-dense: contract the feature axis of h
    # against w4 rows (NT dot_general, as in the TPU flash-attention kernel)
    # so the per-row values land along lanes as a (., TB) vector.
    v = lax.dot_general(w4_ref[...], h.astype(jnp.bfloat16),
                        dimension_numbers=(((1,), (1,)), ((), ())),
                        preferred_element_type=jnp.float32)             # (8, TB)
    out_ref[0] = (v[0:1, :] + b4_ref[0, 0]).astype(out_ref.dtype)       # (1, TB)


def _round_up(x, m):
    return ((x + m - 1) // m) * m


# ---------------------------------------------------------------------------
# Wrapper
# ---------------------------------------------------------------------------
def critic_forward(state, kparams, *, batch_tile=512):
    """state: (B, S) float32, kparams from prepare_params() -> (B, 1) float32."""
    w1, b1, w2, b2, w3, b3, w4r, b4 = kparams
    B, S = state.shape
    H1, H2, H3 = w1.shape[1], w2.shape[1], w3.shape[1]

    # ---- batch tiling ------------------------------------------------------
    # Round B up to the 8-row sublane granule (no-op when B % 8 == 0); beyond
    # that there is NO padding to the tile size -- the last block is ragged.
    B8 = _round_up(B, 8)
    if B8 <= batch_tile:
        TB, G = B8, 1
    else:
        G = pl.cdiv(B8, batch_tile)
        if G % 2:          # even step count -> balanced across v7x's two TCs
            G += 1
        TB = _round_up(pl.cdiv(B8, G), 8)
        G = pl.cdiv(B8, TB)
    if B8 != B:
        state = jnp.pad(state, ((0, B8 - B), (0, 0)))   # only when B % 8 != 0

    def resident(shape):
        # Constant block index: fetched once, never re-fetched by the pipeline.
        return pl.BlockSpec(shape, lambda i: (0, 0))

    flops = 2 * G * TB * (S * H1 + H1 * H2 + H2 * H3 + H3)
    bytes_accessed = (
        G * TB * S * 4                                   # f32 state tiles
        + (S * H1 + H1 * H2 + H2 * H3 + 8 * H3) * 2      # bf16 weights
        + (H1 + H2 + H3 + 1) * 4                         # f32 biases
        + G * TB * 4                                     # f32 output
    )

    out = pl.pallas_call(
        _critic_kernel,
        out_shape=jax.ShapeDtypeStruct((G, 1, TB), jnp.float32),
        grid_spec=pltpu.PrefetchScalarGridSpec(
            num_scalar_prefetch=0,
            grid=(G,),
            in_specs=[
                pl.BlockSpec((TB, S), lambda i: (i, 0)),     # state tile
                resident((S, H1)),  resident((1, H1)),
                resident((H1, H2)), resident((1, H2)),
                resident((H2, H3)), resident((1, H3)),
                resident((8, H3)),                           # head weight rows
                pl.BlockSpec((1, 1), lambda i: (0, 0),
                             memory_space=pltpu.MemorySpace.SMEM),  # head bias
            ],
            out_specs=pl.BlockSpec((1, 1, TB), lambda i: (i, 0, 0)),
        ),
        compiler_params=pltpu.CompilerParams(
            dimension_semantics=("parallel",)),
        cost_estimate=pl.CostEstimate(
            flops=flops, transcendentals=0, bytes_accessed=bytes_accessed),
    )(state, w1, b1, w2, b2, w3, b3, w4r, b4)

    # Output is tiny (4 B/row): reshape tiles back to (B, 1) and drop any
    # ragged tail rows.
    return out.reshape(G * TB, 1)[:B]


# ---------------------------------------------------------------------------
# Parameters
# ---------------------------------------------------------------------------
def init_params(key, state_space):
    """f32 reference parameters, weights stored pre-transposed as (in, out)."""
    dims = [(state_space, 512), (512, 256), (256, 64), (64, 1)]
    params = []
    for (fan_in, fan_out) in dims:
        key, sub = jax.random.split(key)
        # kaiming_uniform_(mode='fan_in', nonlinearity='relu'):
        #   gain = sqrt(2), bound = gain * sqrt(3 / fan_in) = sqrt(6 / fan_in)
        bound = math.sqrt(6.0 / fan_in)
        w = jax.random.uniform(sub, (fan_in, fan_out), jnp.float32,
                               minval=-bound, maxval=bound)
        b = jnp.zeros((1, fan_out), jnp.float32)
        params += [w, b]
    return tuple(params)


def prepare_params(params):
    """One-time layout/dtype conversion for the kernel (NOT per forward call)."""
    w1, b1, w2, b2, w3, b3, w4, b4 = params
    bf = jnp.bfloat16
    # Head weight as an (8, 64) bf16 slab (row 0 real, rows 1..7 zero) so the
    # lane-dense NT head matmul has an 8-aligned M dimension.
    w4_rows = jnp.zeros((8, w4.shape[0]), bf).at[0, :].set(w4[:, 0].astype(bf))
    return (w1.astype(bf), b1.astype(jnp.float32),
            w2.astype(bf), b2.astype(jnp.float32),
            w3.astype(bf), b3.astype(jnp.float32),
            w4_rows, jnp.reshape(b4, (1, 1)).astype(jnp.float32))


# ---------------------------------------------------------------------------
# References
# ---------------------------------------------------------------------------
def reference_forward_f32(state, params):
    w1, b1, w2, b2, w3, b3, w4, b4 = params
    h = jnp.maximum(state @ w1 + b1, 0.0)
    h = jnp.maximum(h @ w2 + b2, 0.0)
    h = jnp.maximum(h @ w3 + b3, 0.0)
    return h @ w4 + b4


def reference_forward_bf16(state, params):
    """Same bf16-input / f32-accumulate recipe as the kernel (tight check)."""
    w1, b1, w2, b2, w3, b3, w4, b4 = params
    bf = jnp.bfloat16
    h = jnp.dot(state.astype(bf), w1.astype(bf), preferred_element_type=jnp.float32)
    h = jnp.maximum(h + b1, 0.0)
    h = jnp.dot(h.astype(bf), w2.astype(bf), preferred_element_type=jnp.float32)
    h = jnp.maximum(h + b2, 0.0)
    h = jnp.dot(h.astype(bf), w3.astype(bf), preferred_element_type=jnp.float32)
    h = jnp.maximum(h + b3, 0.0)
    return jnp.dot(h.astype(bf), w4.astype(bf),
                   preferred_element_type=jnp.float32) + b4


# TODO(synk): critic_PPO2_loss and the Adam optimizer are training-side
# utilities (not part of forward) and are left to standard JAX.

if __name__ == "__main__":
    key = jax.random.PRNGKey(0)
    k_param, k_state, k_state2 = jax.random.split(key, 3)

    state_space = 32
    params = init_params(k_param, state_space)      # f32, (in, out) layout
    kparams = prepare_params(params)                 # one-time bf16 cast

    forward = jax.jit(critic_forward)

    # Small, spec-consistent batch (single tile, TB == 8 after granule round-up).
    state_small = jax.random.normal(k_state, (2, state_space), jnp.float32)
    value_small = jax.block_until_ready(forward(state_small, kparams))
    assert value_small.shape == (2, 1)

    # Larger batch exercising the multi-tile path (G=2, ragged last block).
    state_big = jax.random.normal(k_state2, (1000, state_space), jnp.float32)
    value_big = jax.block_until_ready(forward(state_big, kparams))
    assert value_big.shape == (1000, 1)

    for st, val in ((state_small, value_small), (state_big, value_big)):
        # Tight check against a reference with the identical bf16/f32 recipe.
        ref_bf16 = reference_forward_bf16(st, params)
        assert jnp.allclose(val, ref_bf16, atol=5e-3, rtol=5e-3)
        # Looser check against the pure-f32 PyTorch-equivalent forward.
        ref_f32 = reference_forward_f32(st, params)
        assert jnp.allclose(val, ref_f32, atol=5e-2, rtol=5e-2)

    print("KERNEL_OK")
</pallas_src>

<mosaic_0001>
module attributes {stable_mosaic.version = 11 : i64} {
  func.func @_critic_kernel(%arg0: i32, %arg1: memref<8x32xf32, #tpu.memory_space<vmem>>, %arg2: memref<32x512xbf16, #tpu.memory_space<vmem>>, %arg3: memref<1x512xf32, #tpu.memory_space<vmem>>, %arg4: memref<512x256xbf16, #tpu.memory_space<vmem>>, %arg5: memref<1x256xf32, #tpu.memory_space<vmem>>, %arg6: memref<256x64xbf16, #tpu.memory_space<vmem>>, %arg7: memref<1x64xf32, #tpu.memory_space<vmem>>, %arg8: memref<8x64xbf16, #tpu.memory_space<vmem>>, %arg9: memref<1x1xf32, #tpu.memory_space<smem>>, %arg10: memref<1x1x8xf32, #tpu.memory_space<vmem>>) attributes {dimension_semantics = [#tpu.dimension_semantics<parallel>], iteration_bounds = array<i64: 1>, scalar_prefetch = 0 : i64, scratch_operands = 0 : i64, tpu.core_type = #tpu.core_type<tc>, window_params = [{transform_indices = @transform_0, window_bounds = array<i64: 8, 32>}, {pipeline_mode = #tpu.pipeline_mode<synchronous>, transform_indices = @transform_1, window_bounds = array<i64: 32, 512>}, {pipeline_mode = #tpu.pipeline_mode<synchronous>, transform_indices = @transform_2, window_bounds = array<i64: 1, 512>}, {pipeline_mode = #tpu.pipeline_mode<synchronous>, transform_indices = @transform_3, window_bounds = array<i64: 512, 256>}, {pipeline_mode = #tpu.pipeline_mode<synchronous>, transform_indices = @transform_4, window_bounds = array<i64: 1, 256>}, {pipeline_mode = #tpu.pipeline_mode<synchronous>, transform_indices = @transform_5, window_bounds = array<i64: 256, 64>}, {pipeline_mode = #tpu.pipeline_mode<synchronous>, transform_indices = @transform_6, window_bounds = array<i64: 1, 64>}, {pipeline_mode = #tpu.pipeline_mode<synchronous>, transform_indices = @transform_7, window_bounds = array<i64: 8, 64>}, {transform_indices = @transform_8, window_bounds = array<i64: 1, 1>}, {transform_indices = @transform_9, window_bounds = array<i64: 1, 1, 8>}]} {
    %c0 = arith.constant 0 : index
    %c0_0 = arith.constant 0 : index
    %0 = vector.load %arg1[%c0, %c0_0] : memref<8x32xf32, #tpu.memory_space<vmem>>, vector<8x32xf32>
    %1 = arith.truncf %0 : vector<8x32xf32> to vector<8x32xbf16>
    %c0_1 = arith.constant 0 : index
    %c0_2 = arith.constant 0 : index
    %2 = vector.load %arg2[%c0_1, %c0_2] : memref<32x512xbf16, #tpu.memory_space<vmem>>, vector<32x512xbf16>
    %cst = arith.constant dense<0.000000e+00> : vector<8x512xf32>
    %3 = tpu.matmul %1, %2, %cst {dimension_numbers = #tpu.dot_dimension_numbers<[1], [0], [0], [1], [0, 0, 1, 1], [], []>} : vector<8x32xbf16>, vector<32x512xbf16>, vector<8x512xf32> -> vector<8x512xf32>
    %c0_3 = arith.constant 0 : index
    %c0_4 = arith.constant 0 : index
    %4 = vector.load %arg3[%c0_3, %c0_4] : memref<1x512xf32, #tpu.memory_space<vmem>>, vector<1x512xf32>
    %5 = vector.broadcast %4 : vector<1x512xf32> to vector<8x512xf32>
    %6 = arith.addf %3, %5 : vector<8x512xf32>
    %cst_5 = arith.constant 0.000000e+00 : f32
    %7 = vector.broadcast %cst_5 : f32 to vector<8x512xf32>
    %8 = arith.maximumf %6, %7 : vector<8x512xf32>
    %9 = arith.truncf %8 : vector<8x512xf32> to vector<8x512xbf16>
    %c0_6 = arith.constant 0 : index
    %c0_7 = arith.constant 0 : index
    %10 = vector.load %arg4[%c0_6, %c0_7] : memref<512x256xbf16, #tpu.memory_space<vmem>>, vector<512x256xbf16>
    %cst_8 = arith.constant dense<0.000000e+00> : vector<8x256xf32>
    %11 = tpu.matmul %9, %10, %cst_8 {dimension_numbers = #tpu.dot_dimension_numbers<[1], [0], [0], [1], [0, 0, 1, 1], [], []>} : vector<8x512xbf16>, vector<512x256xbf16>, vector<8x256xf32> -> vector<8x256xf32>
    %c0_9 = arith.constant 0 : index
    %c0_10 = arith.constant 0 : index
    %12 = vector.load %arg5[%c0_9, %c0_10] : memref<1x256xf32, #tpu.memory_space<vmem>>, vector<1x256xf32>
    %13 = vector.broadcast %12 : vector<1x256xf32> to vector<8x256xf32>
    %14 = arith.addf %11, %13 : vector<8x256xf32>
    %cst_11 = arith.constant 0.000000e+00 : f32
    %15 = vector.broadcast %cst_11 : f32 to vector<8x256xf32>
    %16 = arith.maximumf %14, %15 : vector<8x256xf32>
    %17 = arith.truncf %16 : vector<8x256xf32> to vector<8x256xbf16>
    %c0_12 = arith.constant 0 : index
    %c0_13 = arith.constant 0 : index
    %18 = vector.load %arg6[%c0_12, %c0_13] : memref<256x64xbf16, #tpu.memory_space<vmem>>, vector<256x64xbf16>
    %cst_14 = arith.constant dense<0.000000e+00> : vector<8x64xf32>
    %19 = tpu.matmul %17, %18, %cst_14 {dimension_numbers = #tpu.dot_dimension_numbers<[1], [0], [0], [1], [0, 0, 1, 1], [], []>} : vector<8x256xbf16>, vector<256x64xbf16>, vector<8x64xf32> -> vector<8x64xf32>
    %c0_15 = arith.constant 0 : index
    %c0_16 = arith.constant 0 : index
    %20 = vector.load %arg7[%c0_15, %c0_16] : memref<1x64xf32, #tpu.memory_space<vmem>>, vector<1x64xf32>
    %21 = vector.broadcast %20 : vector<1x64xf32> to vector<8x64xf32>
    %22 = arith.addf %19, %21 : vector<8x64xf32>
    %cst_17 = arith.constant 0.000000e+00 : f32
    %23 = vector.broadcast %cst_17 : f32 to vector<8x64xf32>
    %24 = arith.maximumf %22, %23 : vector<8x64xf32>
    %c0_18 = arith.constant 0 : index
    %c0_19 = arith.constant 0 : index
    %25 = vector.load %arg8[%c0_18, %c0_19] : memref<8x64xbf16, #tpu.memory_space<vmem>>, vector<8x64xbf16>
    %26 = arith.truncf %24 : vector<8x64xf32> to vector<8x64xbf16>
    %cst_20 = arith.constant dense<0.000000e+00> : vector<8x8xf32>
    %27 = tpu.matmul %25, %26, %cst_20 {dimension_numbers = #tpu.dot_dimension_numbers<[1], [1], [0], [0], [0, 0, 1, 0], [], []>} : vector<8x64xbf16>, vector<8x64xbf16>, vector<8x8xf32> -> vector<8x8xf32>
    %28 = vector.extract_strided_slice %27 {offsets = [0, 0], sizes = [1, 8], strides = [1, 1]} : vector<8x8xf32> to vector<1x8xf32>
    %c0_21 = arith.constant 0 : index
    %c0_22 = arith.constant 0 : index
    %29 = memref.load %arg9[%c0_21, %c0_22] : memref<1x1xf32, #tpu.memory_space<smem>>
    %30 = vector.broadcast %29 : f32 to vector<1x8xf32>
    %31 = arith.addf %28, %30 : vector<1x8xf32>
    %c0_23 = arith.constant 0 : index
    %c0_24 = arith.constant 0 : index
    %c0_25 = arith.constant 0 : index
    %32 = vector.load %arg10[%c0_23, %c0_24, %c0_25] : memref<1x1x8xf32, #tpu.memory_space<vmem>>, vector<1x1x8xf32>
    %33 = vector.shape_cast %32 : vector<1x1x8xf32> to vector<1x8xf32>
    %34 = vector.shape_cast %31 : vector<1x8xf32> to vector<1x1x8xf32>
    tpu.vector_store %arg10[%c0_23, %c0_24, %c0_25], %34 {strides = array<i32>} : memref<1x1x8xf32, #tpu.memory_space<vmem>>, vector<1x1x8xf32>,
    return
  }
  func.func @transform_0(%arg0: i32) -> (i32, i32) {
    %c0_i32 = arith.constant 0 : i32
    %c0_i32_0 = arith.constant 0 : i32
    return %arg0, %c0_i32 : i32, i32
  }
  func.func @transform_1(%arg0: i32) -> (i32, i32) {
    %c0_i32 = arith.constant 0 : i32
    %c0_i32_0 = arith.constant 0 : i32
    %c0_i32_1 = arith.constant 0 : i32
    return %c0_i32, %c0_i32_0 : i32, i32
  }
  func.func @transform_2(%arg0: i32) -> (i32, i32) {
    %c0_i32 = arith.constant 0 : i32
    %c0_i32_0 = arith.constant 0 : i32
    %c0_i32_1 = arith.constant 0 : i32
    return %c0_i32, %c0_i32_0 : i32, i32
  }
  func.func @transform_3(%arg0: i32) -> (i32, i32) {
    %c0_i32 = arith.constant 0 : i32
    %c0_i32_0 = arith.constant 0 : i32
    %c0_i32_1 = arith.constant 0 : i32
    return %c0_i32, %c0_i32_0 : i32, i32
  }
  func.func @transform_4(%arg0: i32) -> (i32, i32) {
    %c0_i32 = arith.constant 0 : i32
    %c0_i32_0 = arith.constant 0 : i32
    %c0_i32_1 = arith.constant 0 : i32
    return %c0_i32, %c0_i32_0 : i32, i32
  }
  func.func @transform_5(%arg0: i32) -> (i32, i32) {
    %c0_i32 = arith.constant 0 : i32
    %c0_i32_0 = arith.constant 0 : i32
    %c0_i32_1 = arith.constant 0 : i32
    return %c0_i32, %c0_i32_0 : i32, i32
  }
  func.func @transform_6(%arg0: i32) -> (i32, i32) {
    %c0_i32 = arith.constant 0 : i32
    %c0_i32_0 = arith.constant 0 : i32
    %c0_i32_1 = arith.constant 0 : i32
    return %c0_i32, %c0_i32_0 : i32, i32
  }
  func.func @transform_7(%arg0: i32) -> (i32, i32) {
    %c0_i32 = arith.constant 0 : i32
    %c0_i32_0 = arith.constant 0 : i32
    %c0_i32_1 = arith.constant 0 : i32
    return %c0_i32, %c0_i32_0 : i32, i32
  }
  func.func @transform_8(%arg0: i32) -> (i32, i32) {
    %c0_i32 = arith.constant 0 : i32
    %c0_i32_0 = arith.constant 0 : i32
    %c0_i32_1 = arith.constant 0 : i32
    return %c0_i32, %c0_i32_0 : i32, i32
  }
  func.func @transform_9(%arg0: i32) -> (i32, i32, i32) {
    %c0_i32 = arith.constant 0 : i32
    %c0_i32_0 = arith.constant 0 : i32
    %c0_i32_1 = arith.constant 0 : i32
    return %arg0, %c0_i32, %c0_i32_0 : i32, i32, i32
  }
}

</mosaic_0001>

<bundles_post_ra>
// kernel: critic_forward.1
= control target key start
LH: loop header
LB: loop body
LE: loop exit
PB: predicated region body
PF: predicated region fallthrough
CT: control target
= control target key end

     0   :  { %15 = vsyncpa [#allocation4], 0  ;;  %s1211_s30 = smov [#allocation3]   ;;  %s1388_s0 = inlined_call_operand.vmem [shape: f32[8,32], index: 0, kind: input, shape index: {}]   ;;  %s1389_s1 = inlined_call_operand.vmem [shape: bf16[32,512], index: 1, kind: input, shape index: {}]   ;;  %s1390_s2 = inlined_call_operand.vmem [shape: f32[1,512], index: 2, kind: input, shape index: {}]   ;;  %s1391_s3 = inlined_call_operand.hbm [shape: bf16[512,256], index: 3, kind: input, shape index: {}]   ;;  %s1392_s4 = inlined_call_operand.vmem [shape: f32[1,256], index: 4, kind: input, shape index: {}]   ;;  %s1393_s5 = inlined_call_operand.vmem [shape: bf16[256,64], index: 5, kind: input, shape index: {}]   ;;  %s1394_s6 = inlined_call_operand.vmem [shape: f32[1,64], index: 6, kind: input, shape index: {}]   ;;  %s1395_s7 = inlined_call_operand.vmem [shape: bf16[8,64], index: 7, kind: input, shape index: {}]   ;;  %s1396_s8 = inlined_call_operand.<no memory space> [shape: f32[1,1], index: 8, kind: input, shape index: {}]   ;;  %s1397_s9 = inlined_call_operand.vmem [shape: f32[1,1,8], index: 9, kind: output, shape index: {}]  }
   0x1   :  { %s27_s10 = sshll.u32 %s1211_s30, 4  ;;  %s1187_s13 = scalar_lea.hbm %s1391_s3, 8192  ;;  %s28_s10 = int_to_ptr.vmem [resolvable:$true] %s27_s10 }
   0x2   :  { %p1188_p0 = scmp.ne.s32.totalorder %s1391_s3, %s1187_s13  ;;  %p1191_p1 = scmp.lt.u32.totalorder %s1187_s13, %s1391_s3 }
   0x4   :  { %p1193_p2 = pnand %p1191_p1, %p1188_p0 }
   0x6   :  { %1196 = shalt.err (!%p1193_p2)
}
   0x7   :  { %s1197_s18 = scalar_lea.vmem %s28_s10, 8192  ;;  %p1202_p4 = scmp.lt.s32.totalorder %s28_s10, %s28_s10 }
   0x8   :  { %p1198_p3 = scmp.ne.s32.totalorder %s28_s10, %s1197_s18  ;;  %p1203_p5 = scmp.lt.s32.totalorder %s1197_s18, %s1197_s18 }
   0xa   :  { %p1204_p6 = por %p1203_p5, %p1202_p4 }
   0xc   :  { %p1205_p7 = pnand %p1204_p6, %p1198_p3 }
   0xe   :  { %1208 = shalt.err (!%p1205_p7)
}
   0xf   :  { %s1212_s19 = smov 128   ;;  %s1213_s20 = smov 8  }
  0x10   :  { %33 = dma.hbm_to_vmem [thread:$0]  %s1391_s3, 8192, %s28_s10, [#allocation4], %s1212_s19, %s1212_s19, %s1213_s20  }
  0x11   :  { %1209 = dma.done.wait [#allocation4], 8192  }
  0x12   :  { %1210 = vsyncadd [#allocation4], 4294959104  ;;  %v1214_v0 = vmov 0   ;;  %v1063_v1 = vld [vmem:[%s1389_s1 + $0x4] ss:$16 sps:$4 sm:$0xff]   ;;  %vm120_vm0 = vcmask 261120  }
  0x13   :  { %156 = vmatprep.mubr.bf16.mxu0 %v1214_v0  ;;  %v1065_v2 = vld [vmem:[%s1389_s1] ss:$16 sps:$4 sm:$0xff]   ;;  %124 = vmatprep.subr.bf16.mxu0 %v1063_v1  ;;  %v1066_v3 = vld [vmem:[%s1389_s1 + $0x24] ss:$16 sps:$4 sm:$0xff]   ;;  %v1071_v6 = vld [vmem:[%s1389_s1 + $0xc] ss:$16 sps:$4 sm:$0xff]  }
  0x14   :  { %v1068_v4 = vld [vmem:[%s1389_s1 + $0x20] ss:$16 sps:$4 sm:$0xff]   ;;  %125 = vmatpush1.bf16.msra.mxu0 %v1065_v2  ;;  %v1069_v7 = vld [vmem:[%s1389_s1 + $0x8] ss:$16 sps:$4 sm:$0xff]   ;;  %v1075_v9 = vld [vmem:[#allocation3 + $0x4] ss:$8 sps:$4 sm:$0xff]  }
  0x15   :  { %v48_v5 = vld [vmem:[%s1388_s0] sm:$0xff]  ;;  %126 = vmatprep.subr.bf16.mxu0 %v1066_v3  ;;  %v1078_v11 = vld [vmem:[#allocation3 + $0x14] ss:$8 sps:$4 sm:$0xff]   ;;  %610 = vmatprep.subr.bf16.mxu1 %v1075_v9  ;;  %v1080_v13 = vld [vmem:[#allocation3 + $0x10] ss:$8 sps:$4 sm:$0xff]   ;;  %vm1216_vm1 = vmmov 0  }
  0x16   :  { %v49_v8 = vpack.c.bf16 %v48_v5, %v48_v5  ;;  %v1077_v10 = vld [vmem:[#allocation3] ss:$8 sps:$4 sm:$0xff]   ;;  %v1074_v12 = vld [vmem:[%s1389_s1 + $0x2c] ss:$16 sps:$4 sm:$0xff]   ;;  %v1092_v21 = vld [vmem:[#allocation3 + $0x30] ss:$8 sps:$4 sm:$0xff]  }
  0x17   :  { %611 = vmatpush1.bf16.msra.mxu1 %v1077_v10  ;;  %v1081_v14 = vld [vmem:[#allocation3 + $0x24] ss:$8 sps:$4 sm:$0xff]   ;;  %v1072_v15 = vld [vmem:[%s1389_s1 + $0x28] ss:$16 sps:$4 sm:$0xff]   ;;  %v1087_v18 = vld [vmem:[#allocation3 + $0x34] ss:$8 sps:$4 sm:$0xff]  }
  0x18   :  { %127 = vmatpush1.bf16.msra.mxu0 %v1068_v4  ;;  %612 = vmatprep.subr.bf16.mxu1 %v1078_v11  ;;  %v1085_v16 = vld [vmem:[#allocation3 + $0x104] ss:$8 sps:$4 sm:$0xff]   ;;  %v1086_v17 = vld [vmem:[#allocation3 + $0x20] ss:$8 sps:$4 sm:$0xff]   ;;  %v1091_v20 = vld [vmem:[#allocation3 + $0x114] ss:$8 sps:$4 sm:$0xff]  }
  0x19   :  { %165 = vmatprep.subr.bf16.mxu0 %v1071_v6  ;;  %v1083_v19 = vld [vmem:[#allocation3 + $0x100] ss:$8 sps:$4 sm:$0xff]   ;;  %v1093_v22 = vld [vmem:[#allocation3 + $0x44] ss:$8 sps:$4 sm:$0xff]   ;;  %v1089_v23 = vld [vmem:[#allocation3 + $0x110] ss:$8 sps:$4 sm:$0xff]  }
  0x1a   :  { %v1097_v24 = vld [vmem:[#allocation3 + $0x124] ss:$8 sps:$4 sm:$0xff]   ;;  %v1098_v25 = vld [vmem:[#allocation3 + $0x40] ss:$8 sps:$4 sm:$0xff]   ;;  %v1099_v26 = vld [vmem:[#allocation3 + $0x54] ss:$8 sps:$4 sm:$0xff]  }
  0x1b   :  { %939 = vmatmul.mubr.msk.bf16.vlgmr.msra.gmra.mrb[0].mxu0 %vm120_vm0, %v49_v8  ;;  %613 = vmatpush1.bf16.msra.mxu1 %v1080_v13  ;;  %v1095_v27 = vld [vmem:[#allocation3 + $0x120] ss:$8 sps:$4 sm:$0xff]   ;;  %v1103_v28 = vld [vmem:[#allocation3 + $0x134] ss:$8 sps:$4 sm:$0xff]   ;;  %v1104_v29 = vld [vmem:[#allocation3 + $0x50] ss:$8 sps:$4 sm:$0xff]  }
  0x1c   :  { %166 = vmatpush1.bf16.msra.mxu0 %v1069_v7  ;;  %197 = vmatprep.mubr.bf16.mxu0 %v1214_v0  ;;  %v1105_v30 = vld [vmem:[#allocation3 + $0x64] ss:$8 sps:$4 sm:$0xff]   ;;  %v1101_v31 = vld [vmem:[#allocation3 + $0x130] ss:$8 sps:$4 sm:$0xff]   ;;  %v1110_v33 = vld [vmem:[#allocation3 + $0x60] ss:$8 sps:$4 sm:$0xff]  }
  0x1d   :  { %167 = vmatprep.subr.bf16.mxu0 %v1074_v12  ;;  %614 = vmatprep.subr.bf16.mxu1 %v1081_v14  ;;  %v1109_v32 = vld [vmem:[#allocation3 + $0x144] ss:$8 sps:$4 sm:$0xff]   ;;  %v1111_v34 = vld [vmem:[#allocation3 + $0x74] ss:$8 sps:$4 sm:$0xff]   ;;  %v1107_v35 = vld [vmem:[#allocation3 + $0x140] ss:$8 sps:$4 sm:$0xff]   ;;  %v60_v12 = vlaneseq }
  0x1e   :  { %v1115_v36 = vld [vmem:[#allocation3 + $0x154] ss:$8 sps:$4 sm:$0xff]   ;;  %v1116_v37 = vld [vmem:[#allocation3 + $0x70] ss:$8 sps:$4 sm:$0xff]   ;;  %v1117_v38 = vld [vmem:[#allocation3 + $0x84] ss:$8 sps:$4 sm:$0xff]  }
  0x1f   :  { %615 = vmatpush1.bf16.msra.mxu1 %v1086_v17  ;;  %v1113_v39 = vld [vmem:[#allocation3 + $0x150] ss:$8 sps:$4 sm:$0xff]   ;;  %v1121_v40 = vld [vmem:[#allocation3 + $0x164] ss:$8 sps:$4 sm:$0xff]   ;;  %v1122_v41 = vld [vmem:[#allocation3 + $0x80] ss:$8 sps:$4 sm:$0xff]  }
  0x20   :  { %168 = vmatpush1.bf16.msra.mxu0 %v1072_v15  ;;  %616 = vmatprep.subr.bf16.mxu1 %v1087_v18  ;;  %v1123_v42 = vld [vmem:[#allocation3 + $0x94] ss:$8 sps:$4 sm:$0xff]   ;;  %v1119_v43 = vld [vmem:[#allocation3 + $0x160] ss:$8 sps:$4 sm:$0xff]   ;;  %v1128_v45 = vld [vmem:[#allocation3 + $0x90] ss:$8 sps:$4 sm:$0xff]  }
  0x21   :  { %651 = vmatprep.subr.bf16.mxu0 %v1085_v16  ;;  %v1127_v44 = vld [vmem:[#allocation3 + $0x174] ss:$8 sps:$4 sm:$0xff]   ;;  %v1129_v46 = vld [vmem:[#allocation3 + $0xa4] ss:$8 sps:$4 sm:$0xff]   ;;  %v1125_v47 = vld [vmem:[#allocation3 + $0x170] ss:$8 sps:$4 sm:$0xff]  }
  0x22   :  { %v1133_v48 = vld [vmem:[#allocation3 + $0x184] ss:$8 sps:$4 sm:$0xff]   ;;  %v1134_v49 = vld [vmem:[#allocation3 + $0xa0] ss:$8 sps:$4 sm:$0xff]   ;;  %v1135_v50 = vld [vmem:[#allocation3 + $0xb4] ss:$8 sps:$4 sm:$0xff]  }
  0x23   :  { %940 = vmatmul.mubr.msk.bf16.vlgmr.msra.gmra.mrb[4].mxu0 %vm120_vm0, %v49_v8  ;;  %617 = vmatpush1.bf16.msra.mxu1 %v1092_v21  ;;  %v1131_v51 = vld [vmem:[#allocation3 + $0x180] ss:$8 sps:$4 sm:$0xff]   ;;  %v1139_v52 = vld [vmem:[#allocation3 + $0x194] ss:$8 sps:$4 sm:$0xff]   ;;  %v1140_v53 = vld [vmem:[#allocation3 + $0xb0] ss:$8 sps:$4 sm:$0xff]  }
  0x24   :  { %652 = vmatpush1.bf16.msra.mxu0 %v1083_v19  ;;  %618 = vmatprep.subr.bf16.mxu1 %v1093_v22  ;;  %v1141_v54 = vld [vmem:[#allocation3 + $0xc4] ss:$8 sps:$4 sm:$0xff]   ;;  %v1137_v55 = vld [vmem:[#allocation3 + $0x190] ss:$8 sps:$4 sm:$0xff]   ;;  %v1146_v57 = vld [vmem:[#allocation3 + $0xc0] ss:$8 sps:$4 sm:$0xff]  }
  0x25   :  { %653 = vmatprep.subr.bf16.mxu0 %v1091_v20  ;;  %v1145_v56 = vld [vmem:[#allocation3 + $0x1a4] ss:$8 sps:$4 sm:$0xff]   ;;  %v1147_v58 = vld [vmem:[#allocation3 + $0xd4] ss:$8 sps:$4 sm:$0xff]   ;;  %v1143_v59 = vld [vmem:[#allocation3 + $0x1a0] ss:$8 sps:$4 sm:$0xff]  }
  0x26   :  { %v1151_v60 = vld [vmem:[#allocation3 + $0x1b4] ss:$8 sps:$4 sm:$0xff]   ;;  %v1152_v61 = vld [vmem:[#allocation3 + $0xd0] ss:$8 sps:$4 sm:$0xff]   ;;  %v1153_v63 = vld [vmem:[#allocation3 + $0xe4] ss:$8 sps:$4 sm:$0xff]  }
  0x27   :  { %619 = vmatpush1.bf16.msra.mxu1 %v1098_v25  ;;  %v1149_v62 = vld [vmem:[#allocation3 + $0x1b0] ss:$8 sps:$4 sm:$0xff]   ;;  %v1157_v0 = vld [vmem:[#allocation3 + $0x1c4] ss:$8 sps:$4 sm:$0xff]   ;;  %v1155_v1 = vld [vmem:[#allocation3 + $0x1c0] ss:$8 sps:$4 sm:$0xff]  }
  0x28   :  { %654 = vmatpush1.bf16.msra.mxu0 %v1089_v23  ;;  %620 = vmatprep.subr.bf16.mxu1 %v1099_v26  ;;  %v1158_v2 = vld [vmem:[#allocation3 + $0xe0] ss:$8 sps:$4 sm:$0xff]   ;;  %v1159_v3 = vld [vmem:[#allocation3 + $0xf4] ss:$8 sps:$4 sm:$0xff]   ;;  %v1161_v5 = vld [vmem:[#allocation3 + $0x1d0] ss:$8 sps:$4 sm:$0xff]  }
  0x29   :  { %655 = vmatprep.subr.bf16.mxu0 %v1097_v24  ;;  %v1163_v4 = vld [vmem:[#allocation3 + $0x1d4] ss:$8 sps:$4 sm:$0xff]   ;;  %v1164_v6 = vld [vmem:[#allocation3 + $0xf0] ss:$8 sps:$4 sm:$0xff]   ;;  %v1167_v7 = vld [vmem:[#allocation3 + $0x1e4] ss:$8 sps:$4 sm:$0xff]  }
  0x2a   :  { %v1165_v8 = vld [vmem:[#allocation3 + $0x1e0] ss:$8 sps:$4 sm:$0xff]   ;;  %v1170_v9 = vld [vmem:[#allocation3 + $0x1f4] ss:$8 sps:$4 sm:$0xff]   ;;  %v1168_v10 = vld [vmem:[#allocation3 + $0x1f0] ss:$8 sps:$4 sm:$0xff]  }
  0x2b   :  { %621 = vmatpush1.bf16.msra.mxu1 %v1104_v29  ;;  %v1171_v11 = vld [vmem:[%s1393_s5 + $0x40] sm:$0xff]   ;;  %v1311_v13 = vshrl.u32 %v60_v12, 7  ;;  %vm874_vm2 = vcmask 523264   ;;  %vm924_vm3 = vcmask 57344  }
  0x2c   :  { %656 = vmatpush1.bf16.msra.mxu0 %v1095_v27  ;;  %622 = vmatprep.subr.bf16.mxu1 %v1105_v30  ;;  %v58_v15 = vld [vmem:[%s1390_s2] sm:$0xf] }
  0x2d   :  { %657 = vmatprep.subr.bf16.mxu0 %v1103_v28  ;;  %v62_v14 = vsub.s32 0, %v1311_v13  ;;  %v66_v16 = vsub.s32 1, %v1311_v13  ;;  %v70_v22 = vsub.s32 2, %v1311_v13  ;;  %v74_v25 = vsub.s32 3, %v1311_v13 }
  0x2f   :  { %623 = vmatpush1.bf16.msra.mxu1 %v1110_v33  ;;  %v63_v17 = vrot.slane %v58_v15, %v62_v14  ;;  %v67_v18 = vrot.slane %v58_v15, %v66_v16  ;;  %v71_v29 = vrot.slane %v58_v15, %v70_v22 }
  0x30   :  { %658 = vmatpush1.bf16.msra.mxu0 %v1101_v31  ;;  %624 = vmatprep.subr.bf16.mxu1 %v1111_v34  ;;  %v75_v31 = vrot.slane %v58_v15, %v74_v25  ;;  %v1173_v34 = vld [vmem:[%s1393_s5 + $0x48] sm:$0xff]   ;;  %v1215_v15 = vmov 0.0   ;;  %v922_v25 = vstv %s1396_s8 }
  0x31   :  { %659 = vmatprep.subr.bf16.mxu0 %v1109_v32  ;;  %v1172_v32 = vld [vmem:[%s1393_s5] sm:$0xff]  }
  0x33   :  { %625 = vmatpush1.bf16.msra.mxu1 %v1116_v37 }
  0x34   :  { %660 = vmatpush1.bf16.msra.mxu0 %v1107_v35  ;;  %626 = vmatprep.subr.bf16.mxu1 %v1117_v38 }
  0x35   :  { %661 = vmatprep.subr.bf16.mxu0 %v1115_v36 }
  0x37   :  { %627 = vmatpush1.bf16.msra.mxu1 %v1122_v41 }
  0x38   :  { %662 = vmatpush1.bf16.msra.mxu0 %v1113_v39  ;;  %628 = vmatprep.subr.bf16.mxu1 %v1123_v42 }
  0x39   :  { %663 = vmatprep.subr.bf16.mxu0 %v1121_v40  ;;  %v1174_v40 = vld [vmem:[%s1393_s5 + $0x8] sm:$0xff]  }
  0x3b   :  { %629 = vmatpush1.bf16.msra.mxu1 %v1128_v45 }
  0x3c   :  { %664 = vmatpush1.bf16.msra.mxu0 %v1119_v43  ;;  %630 = vmatprep.subr.bf16.mxu1 %v1129_v46  ;;  %v1175_v43 = vld [vmem:[%s1393_s5 + $0x50] sm:$0xff]  }
  0x3d   :  { %665 = vmatprep.subr.bf16.mxu0 %v1127_v44  ;;  %v1176_v46 = vld [vmem:[%s1393_s5 + $0x10] sm:$0xff]  }
  0x3f   :  { %631 = vmatpush1.bf16.msra.mxu1 %v1134_v49  ;;  %v1178_v49 = vld [vmem:[%s1393_s5 + $0x18] sm:$0xff]  }
  0x40   :  { %666 = vmatpush1.bf16.msra.mxu0 %v1125_v47  ;;  %632 = vmatprep.subr.bf16.mxu1 %v1135_v50  ;;  %v1179_v50 = vld [vmem:[%s1393_s5 + $0x60] sm:$0xff]  }
  0x41   :  { %667 = vmatprep.subr.bf16.mxu0 %v1133_v48  ;;  %v1177_v48 = vld [vmem:[%s1393_s5 + $0x58] sm:$0xff]  }
  0x43   :  { %633 = vmatpush1.bf16.msra.mxu1 %v1140_v53  ;;  %v1182_v53 = vld [vmem:[%s1393_s5 + $0x28] sm:$0xff]  }
  0x44   :  { %668 = vmatpush1.bf16.msra.mxu0 %v1131_v51  ;;  %634 = vmatprep.subr.bf16.mxu1 %v1141_v54  ;;  %v1180_v51 = vld [vmem:[%s1393_s5 + $0x20] sm:$0xff]   ;;  %v1183_v54 = vld [vmem:[%s1393_s5 + $0x70] sm:$0xff]  }
  0x45   :  { %669 = vmatprep.subr.bf16.mxu0 %v1139_v52  ;;  %v1181_v52 = vld [vmem:[%s1393_s5 + $0x68] sm:$0xff]  }
  0x47   :  { %635 = vmatpush1.bf16.msra.mxu1 %v1146_v57  ;;  %v1186_v57 = vld [vmem:[%s1393_s5 + $0x38] sm:$0xff]  }
  0x48   :  { %670 = vmatpush1.bf16.msra.mxu0 %v1137_v55  ;;  %636 = vmatprep.subr.bf16.mxu1 %v1147_v58  ;;  %v1184_v55 = vld [vmem:[%s1393_s5 + $0x30] sm:$0xff]   ;;  %v278_v58 = vld [vmem:[%s1392_s4] sm:$0x3] }
  0x49   :  { %671 = vmatprep.subr.bf16.mxu0 %v1145_v56  ;;  %v1185_v56 = vld [vmem:[%s1393_s5 + $0x78] sm:$0xff]  }
  0x4b   :  { %637 = vmatpush1.bf16.msra.mxu1 %v1152_v61 }
  0x4c   :  { %672 = vmatpush1.bf16.msra.mxu0 %v1143_v59  ;;  %638 = vmatprep.subr.bf16.mxu1 %v1153_v63 }
  0x4d   :  { %673 = vmatprep.subr.bf16.mxu0 %v1151_v60 }
  0x4f   :  { %639 = vmatpush1.bf16.msra.mxu1 %v1158_v2 }
  0x50   :  { %674 = vmatpush1.bf16.msra.mxu0 %v1149_v62  ;;  %640 = vmatprep.subr.bf16.mxu1 %v1159_v3  ;;  %v283_v62 = vrot.slane %v278_v58, %v62_v14  ;;  %v1005_v14 = vld [vmem:[%s1394_s6] ss:$0 sm:$0xff] }
  0x51   :  { %675 = vmatprep.subr.bf16.mxu0 %v1157_v0  ;;  %v287_v0 = vrot.slane %v278_v58, %v66_v16 }
  0x53   :  { %641 = vmatpush1.bf16.msra.mxu1 %v1164_v6 }
  0x54   :  { %676 = vmatpush1.bf16.msra.mxu0 %v1155_v1  ;;  %1023 = vmatprep.subr.bf16.mxu1 %v1171_v11 }
  0x55   :  { %677 = vmatprep.subr.bf16.mxu0 %v1163_v4 }
  0x58   :  { %678 = vmatpush1.bf16.msra.mxu0 %v1161_v5 }
  0x59   :  { %679 = vmatprep.subr.bf16.mxu0 %v1167_v7 }
  0x5c   :  { %680 = vmatpush1.bf16.msra.mxu0 %v1165_v8 }
  0x5d   :  { %681 = vmatprep.subr.bf16.mxu0 %v1170_v9 }
  0x60   :  { %682 = vmatpush1.bf16.msra.mxu0 %v1168_v10 }
  0x61   :  { %1047 = vmatprep.subr.bf16.mxu0 %v1215_v15 }
  0xee   :  { %v158_v19 = vpop.f32.mrb[0].mxu0 }
  0xef   :  { %v159_v20 = vadd.f32 %v158_v19, %v63_v17  ;;  %v160_v21 = vpop.f32.mrb[1].mxu0 }
  0xf0   :  { %v161_v23 = vadd.f32 %v160_v21, %v67_v18  ;;  %v162_v24 = vpop.f32.mrb[2].mxu0 }
  0xf1   :  { %v206_v26 = vmax.f32 %v159_v20, 0.0  ;;  %v163_v27 = vpop.f32.mrb[3].mxu0  ;;  %v872_v24 = vld [vmem:[%s1395_s7] sm:$0xf] }
  0xf2   :  { %v207_v28 = vmax.f32 %v161_v23, 0.0 }
  0xf3   :  { %v210_v33 = vpack.c.bf16 %v206_v26, %v206_v26 }
  0xf4   :  { %v211_v30 = vpack.c.bf16 %v207_v28, %v207_v28 }
  0xf6   :  { %v199_v35 = vpop.f32.mrb[4].mxu0  ;;  %642 = vmatprep.mubr.bf16.mxu1 %v211_v30 }
  0xf7   :  { %v200_v36 = vadd.f32 %v199_v35, %v71_v29  ;;  %v201_v37 = vpop.f32.mrb[5].mxu0  ;;  %643 = vmatmul.mubr.bf16.vlgmr.msra.gmra.mrb[0].mxu1 %v210_v33 }
  0xf8   :  { %v202_v38 = vadd.f32 %v201_v37, %v75_v31  ;;  %v203_v39 = vpop.f32.mrb[6].mxu0  ;;  %1024 = vmatpush3.bf16.msra.mxu1 %v1172_v32 }
  0xf9   :  { %v208_v41 = vmax.f32 %v200_v36, 0.0  ;;  %v204_v42 = vpop.f32.mrb[7].mxu0  ;;  %1025 = vmatprep.subr.bf16.mxu1 %v1173_v34 }
  0xfa   :  { %v209_v44 = vmax.f32 %v202_v38, 0.0 }
  0xfb   :  { %v212_v47 = vpack.c.bf16 %v208_v41, %v208_v41 }
  0xfc   :  { %v213_v45 = vpack.c.bf16 %v209_v44, %v209_v44  ;;  %1026 = vmatpush3.bf16.msra.mxu1 %v1174_v40 }
  0xfd   :  { %1027 = vmatprep.subr.bf16.mxu1 %v1175_v43 }
  0xfe   :  { %683 = vmatprep.mubr.bf16.mxu0 %v213_v45 }
  0xff   :  { %684 = vmatmul.mubr.bf16.vlgmr.msra.gmra.mrb[8].mxu0 %v212_v47 }
 0x100   :  { %1028 = vmatpush3.bf16.msra.mxu1 %v1176_v46  ;;  %1049 = vmatprep.mubr.msk.bf16.mxu0 %vm1216_vm1, %v1215_v15 }
 0x101   :  { %1029 = vmatprep.subr.bf16.mxu1 %v1177_v48 }
 0x104   :  { %1030 = vmatpush3.bf16.msra.mxu1 %v1178_v49 }
 0x105   :  { %1031 = vmatprep.subr.bf16.mxu1 %v1179_v50 }
 0x108   :  { %1032 = vmatpush3.bf16.msra.mxu1 %v1180_v51 }
 0x109   :  { %1033 = vmatprep.subr.bf16.mxu1 %v1181_v52 }
 0x10c   :  { %1034 = vmatpush3.bf16.msra.mxu1 %v1182_v53 }
 0x10d   :  { %1035 = vmatprep.subr.bf16.mxu1 %v1183_v54 }
 0x110   :  { %1036 = vmatpush3.bf16.msra.mxu1 %v1184_v55 }
 0x111   :  { %1037 = vmatprep.subr.bf16.mxu1 %v1185_v56 }
 0x114   :  { %1038 = vmatpush3.bf16.msra.mxu1 %v1186_v57 }
 0x1ca   :  { %v644_v59 = vpop.f32.mrb[0].mxu1 }
 0x1cb   :  { %v646_v60 = vpop.f32.mrb[1].mxu1  ;;  %v645_v1 = vadd.f32 %v644_v59, %v283_v62 }
 0x1cc   :  { %v648_v61 = vpop.f32.mrb[2].mxu1  ;;  %v647_v2 = vadd.f32 %v646_v60, %v287_v0 }
 0x1cd   :  { %v649_v63 = vpop.f32.mrb[3].mxu1 }
 0x1d2   :  { %v685_v3 = vpop.f32.mrb[8].mxu0 }
 0x1d3   :  { %v686_v4 = vadd.f32 %v685_v3, %v645_v1  ;;  %v687_v5 = vpop.f32.mrb[9].mxu0 }
 0x1d4   :  { %v688_v6 = vadd.f32 %v687_v5, %v647_v2  ;;  %v689_v7 = vpop.f32.mrb[10].mxu0 }
 0x1d5   :  { %v692_v8 = vmax.f32 %v686_v4, 0.0  ;;  %v690_v9 = vpop.f32.mrb[11].mxu0 }
 0x1d6   :  { %v693_v10 = vmax.f32 %v688_v6, 0.0 }
 0x1d7   :  { %v694_v12 = vpack.c.bf16 %v692_v8, %v692_v8 }
 0x1d8   :  { %v695_v11 = vpack.c.bf16 %v693_v10, %v693_v10 }
 0x1da   :  { %863 = vmatprep.mubr.bf16.mxu1 %v695_v11 }
 0x1db   :  { %864 = vmatmul.mubr.bf16.vlgmr.msra.gmra.mrb[4].mxu1 %v694_v12 }
 0x2ae   :  { %v1039_v13 = vpop.f32.mrb[4].mxu1 }
 0x2af   :  { %v1040_v16 = vpop.f32.mrb[5].mxu1 }
 0x2b0   :  { %v1041_v17 = vadd.f32 %v1040_v16, %v1039_v13  ;;  %v1042_v18 = vpop.f32.mrb[6].mxu1 }
 0x2b1   :  { %v1043_v19 = vpop.f32.mrb[7].mxu1 }
 0x2b2   :  { %v866_v20 = vadd.f32 %v1041_v17, %v1005_v14 }
 0x2b4   :  { %v871_v21 = vmax.f32 %v866_v20, 0.0 }
 0x2b6   :  { %v873_v22 = vpack.c.bf16 %v871_v21, %v871_v21 }
 0x2b8   :  { %v879_v23 = vsel %vm874_vm2, %v873_v22, 0 }
 0x2b9   :  { %1048 = vmatpush3.bf16.xpose.msra.mxu0 %v879_v23 }
 0x2c0   :  { %1050 = vmatmul.mubr.msk.bf16.vlgmr.msra.gmra.mrb[12].mxu0 %vm874_vm2, %v872_v24 }
 0x393   :  { %v915_v26 = vpop.f32.mrb[12].mxu0 }
 0x394   :  { %v923_v27 = vadd.f32 %v922_v25, %v915_v26  ;;  %v1051_v28 = vpop.f32.mrb[13].mxu0 }
 0x395   :  { %v918_v29 = vpop.f32.mrb[14].mxu0 }
 0x396   :  { %925 = vst.msk [vmem:[%s1397_s9] sm:$0x1] %vm924_vm3, %v923_v27  ;;  %v1052_v30 = vpop.f32.mrb[15].mxu0 }
 0x397   :  { %930 = vsyncpa [#allocation4], 1 }

</bundles_post_ra>
